<compile_context>
chip_gen: v5e
topology: v5e:2x2
jax: 0.10.0
libtpu: 0.0.40
codegen_flags: <defaults>
</compile_context>

<pallas_src>
import math

import jax
import jax.numpy as jnp
from jax.experimental import pallas as pl
from jax.experimental.pallas import tpu as pltpu

IN_FEATURES = 8


def _attn_kernel(x_ref, w_ref, b_ref, out_ref):
    # Blocks:
    #   x_ref  : (Bb, 3S, F)  -- rows [q_in ; k_in ; v_in] stacked per batch
    #   w_ref  : (F, 3D)      -- [wq/sqrt(D) | wk | wv]
    #   b_ref  : (1, 3D)      -- [bq/sqrt(D) | bk | bv]
    #   out_ref: (Bb, S, D)
    Bb, S3, F = x_ref.shape
    S = S3 // 3
    D = w_ref.shape[1] // 3

    # ONE fused projection matmul covering every batch and every q/k/v stream:
    # (Bb*3S, F) @ (F, 3D).  The off-diagonal column blocks (e.g. q_in @ wk) are
    # computed and discarded, which is free -- it is a single MXU pass either way.
    x = x_ref[...].reshape(Bb * S3, F)
    qkv = jnp.dot(x, w_ref[...], preferred_element_type=jnp.float32) + b_ref[...]

    # Attention per fused batch element.  Bb is kept small by _pick_batch_block,
    # so a static unrolled loop is fine.
    # TODO(synk): for large Bb/S, switch to lax.fori_loop (bounds vreg live
    # ranges) and tile the K axis with an online-softmax (flash) accumulator,
    # casting q/k/attn to bf16 (f32 accumulate) for the MXU on v6e/v7x.
    for bi in range(Bb):
        base = bi * S3
        q = qkv[base + 0 * S: base + 1 * S, 0 * D: 1 * D]   # scale pre-folded
        k = qkv[base + 1 * S: base + 2 * S, 1 * D: 2 * D]
        v = qkv[base + 2 * S: base + 3 * S, 2 * D: 3 * D]

        # Scores: contract the D axis of q and k directly (no explicit k.T).
        scores = jax.lax.dot_general(
            q, k, dimension_numbers=(((1,), (1,)), ((), ())),
            preferred_element_type=jnp.float32)              # (S, S)

        # Numerically stable softmax along the last dim (exact reciprocal).
        m = jnp.max(scores, axis=-1, keepdims=True)
        e = jnp.exp(scores - m)
        denom = jnp.sum(e, axis=-1, keepdims=True)
        attn = e * pl.reciprocal(denom, approx=False)

        out_ref[bi] = jnp.dot(
            attn, v, preferred_element_type=jnp.float32).astype(out_ref.dtype)


def _pick_batch_block(batch: int, seq: int, dim: int) -> int:
    """How many batch elements to fuse into one grid step.

    The fixed per-grid-step pipeline cost is ~0.35 us (~600 cycles).  Only split
    the batch across grid steps when a single batch element carries clearly more
    MXU work than that; otherwise run the whole batch in one step (grid=(1,)).
    """
    # Rough useful flops per batch element: projection + the two attention matmuls.
    flops_per_batch = 2 * (3 * seq) * IN_FEATURES * (3 * dim) + 4 * seq * seq * dim
    WORK_THRESHOLD_FLOPS = 500_000   # ~ >1 us of MXU work per step before splitting
    if flops_per_batch < WORK_THRESHOLD_FLOPS:
        return batch
    # Large per-batch work: cap fused batches per step (vreg pressure), even chunks.
    for cand in (8, 4, 2, 1):
        if batch % cand == 0:
            return cand
    return 1


def single_head_attention(q_in, k_in, v_in, params):
    """q_in/k_in/v_in: [B, S, 8] float32. Returns [B, S, attn_dim] float32."""
    B, S, F = q_in.shape
    assert F == IN_FEATURES
    wq, bq, wk, bk, wv, bv = params
    D = wq.shape[1]
    scale = 1.0 / math.sqrt(D)

    # Fold 1/sqrt(D) into the query projection (weights + bias): zero in-kernel
    # scale work.  Fuse the three projections into one [F, 3D] weight / [1, 3D] bias.
    w_fused = jnp.concatenate([wq * scale, wk, wv], axis=1)   # (F, 3D)
    b_fused = jnp.concatenate([bq * scale, bk, bv], axis=1)   # (1, 3D)

    # Pre-stack the three inputs into one (B, 3S, F) slab: one input DMA per step.
    x = jnp.concatenate([q_in, k_in, v_in], axis=1)           # (B, 3S, F)

    Bb = _pick_batch_block(B, S, D)
    grid = (B // Bb,)

    return pl.pallas_call(
        _attn_kernel,
        out_shape=jax.ShapeDtypeStruct((B, S, D), jnp.float32),
        grid_spec=pltpu.PrefetchScalarGridSpec(
            num_scalar_prefetch=0,
            grid=grid,
            in_specs=[
                pl.BlockSpec((Bb, 3 * S, F), lambda i: (i, 0, 0)),
                pl.BlockSpec((F, 3 * D), lambda i: (0, 0)),
                pl.BlockSpec((1, 3 * D), lambda i: (0, 0)),
            ],
            out_specs=pl.BlockSpec((Bb, S, D), lambda i: (i, 0, 0)),
        ),
        compiler_params=pltpu.CompilerParams(
            # Single-step grid at these shapes; mark parallel only when split.
            dimension_semantics=("arbitrary",) if grid == (1,) else ("parallel",),
        ),
    )(x, w_fused, b_fused)


def init_params(key, attn_dim):
    """Deterministic init mimicking nn.Linear(8, attn_dim): U(-1/sqrt(8), 1/sqrt(8))."""
    bound = 1.0 / math.sqrt(IN_FEATURES)
    keys = jax.random.split(key, 6)
    wq = jax.random.uniform(keys[0], (IN_FEATURES, attn_dim), jnp.float32, -bound, bound)
    bq = jax.random.uniform(keys[1], (1, attn_dim), jnp.float32, -bound, bound)
    wk = jax.random.uniform(keys[2], (IN_FEATURES, attn_dim), jnp.float32, -bound, bound)
    bk = jax.random.uniform(keys[3], (1, attn_dim), jnp.float32, -bound, bound)
    wv = jax.random.uniform(keys[4], (IN_FEATURES, attn_dim), jnp.float32, -bound, bound)
    bv = jax.random.uniform(keys[5], (1, attn_dim), jnp.float32, -bound, bound)
    return (wq, bq, wk, bk, wv, bv)


def _reference(q_in, k_in, v_in, params):
    # Full-precision reference (precision='highest' so the XLA path does not
    # silently drop to single-pass bf16 on TPU).
    wq, bq, wk, bk, wv, bv = params
    hp = jax.lax.Precision.HIGHEST
    q = jnp.einsum("bsf,fd->bsd", q_in, wq, precision=hp) + bq
    k = jnp.einsum("bsf,fd->bsd", k_in, wk, precision=hp) + bk
    v = jnp.einsum("bsf,fd->bsd", v_in, wv, precision=hp) + bv
    scores = jnp.einsum("bqd,bkd->bqk", q, k, precision=hp) / math.sqrt(wq.shape[1])
    attn = jax.nn.softmax(scores, axis=-1)
    return jnp.einsum("bqk,bkd->bqd", attn, v, precision=hp)


if __name__ == "__main__":
    B, S, ATTN_DIM = 2, 8, 32
    key = jax.random.PRNGKey(0)
    k_inp, k_par = jax.random.split(key)
    kq, kk, kv = jax.random.split(k_inp, 3)

    q_in = jax.random.normal(kq, (B, S, IN_FEATURES), jnp.float32)
    k_in = jax.random.normal(kk, (B, S, IN_FEATURES), jnp.float32)
    v_in = jax.random.normal(kv, (B, S, IN_FEATURES), jnp.float32)

    params = init_params(k_par, ATTN_DIM)

    out = single_head_attention(q_in, k_in, v_in, params)
    out = jax.block_until_ready(out)

    ref = _reference(q_in, k_in, v_in, params)
    assert out.shape == (B, S, ATTN_DIM), out.shape
    err = float(jnp.max(jnp.abs(out - ref)))
    assert jnp.allclose(out, ref, atol=1e-4, rtol=1e-4), err

    print("KERNEL_OK")
</pallas_src>

<mosaic_0001>
module attributes {stable_mosaic.version = 11 : i64} {
  func.func @_attn_kernel(%arg0: i32, %arg1: memref<2x24x8xf32, #tpu.memory_space<vmem>>, %arg2: memref<8x96xf32, #tpu.memory_space<vmem>>, %arg3: memref<1x96xf32, #tpu.memory_space<vmem>>, %arg4: memref<2x8x32xf32, #tpu.memory_space<vmem>>) attributes {dimension_semantics = [#tpu.dimension_semantics<arbitrary>], iteration_bounds = array<i64: 1>, scalar_prefetch = 0 : i64, scratch_operands = 0 : i64, tpu.core_type = #tpu.core_type<tc>, window_params = [{transform_indices = @transform_0, window_bounds = array<i64: 2, 24, 8>}, {pipeline_mode = #tpu.pipeline_mode<synchronous>, transform_indices = @transform_1, window_bounds = array<i64: 8, 96>}, {pipeline_mode = #tpu.pipeline_mode<synchronous>, transform_indices = @transform_2, window_bounds = array<i64: 1, 96>}, {transform_indices = @transform_3, window_bounds = array<i64: 2, 8, 32>}]} {
    %c0 = arith.constant 0 : index
    %c0_0 = arith.constant 0 : index
    %c0_1 = arith.constant 0 : index
    %0 = vector.load %arg1[%c0, %c0_0, %c0_1] : memref<2x24x8xf32, #tpu.memory_space<vmem>>, vector<2x24x8xf32>
    %1 = vector.shape_cast %0 : vector<2x24x8xf32> to vector<48x8xf32>
    %c0_2 = arith.constant 0 : index
    %c0_3 = arith.constant 0 : index
    %2 = vector.load %arg2[%c0_2, %c0_3] : memref<8x96xf32, #tpu.memory_space<vmem>>, vector<8x96xf32>
    %cst = arith.constant dense<0.000000e+00> : vector<48x96xf32>
    %3 = tpu.matmul %1, %2, %cst {dimension_numbers = #tpu.dot_dimension_numbers<[1], [0], [0], [1], [0, 0, 1, 1], [], []>} : vector<48x8xf32>, vector<8x96xf32>, vector<48x96xf32> -> vector<48x96xf32>
    %c0_4 = arith.constant 0 : index
    %c0_5 = arith.constant 0 : index
    %4 = vector.load %arg3[%c0_4, %c0_5] : memref<1x96xf32, #tpu.memory_space<vmem>>, vector<1x96xf32>
    %5 = vector.broadcast %4 : vector<1x96xf32> to vector<48x96xf32>
    %6 = arith.addf %3, %5 : vector<48x96xf32>
    %7 = vector.extract_strided_slice %6 {offsets = [0, 0], sizes = [8, 32], strides = [1, 1]} : vector<48x96xf32> to vector<8x32xf32>
    %8 = vector.extract_strided_slice %6 {offsets = [8, 32], sizes = [8, 32], strides = [1, 1]} : vector<48x96xf32> to vector<8x32xf32>
    %9 = vector.extract_strided_slice %6 {offsets = [16, 64], sizes = [8, 32], strides = [1, 1]} : vector<48x96xf32> to vector<8x32xf32>
    %cst_6 = arith.constant dense<0.000000e+00> : vector<8x8xf32>
    %10 = tpu.matmul %7, %8, %cst_6 {dimension_numbers = #tpu.dot_dimension_numbers<[1], [1], [0], [0], [0, 0, 1, 0], [], []>} : vector<8x32xf32>, vector<8x32xf32>, vector<8x8xf32> -> vector<8x8xf32>
    %cst_7 = arith.constant dense<0xFF800000> : vector<8xf32>
    %11 = vector.multi_reduction <maximumf>, %10, %cst_7 [1] : vector<8x8xf32> to vector<8xf32>
    %12 = vector.shape_cast %11 : vector<8xf32> to vector<8x1xf32>
    %13 = vector.broadcast %12 : vector<8x1xf32> to vector<8x8xf32>
    %14 = arith.subf %10, %13 : vector<8x8xf32>
    %15 = math.exp %14 : vector<8x8xf32>
    %cst_8 = arith.constant dense<0.000000e+00> : vector<8xf32>
    %16 = vector.multi_reduction <add>, %15, %cst_8 [1] : vector<8x8xf32> to vector<8xf32>
    %17 = vector.shape_cast %16 : vector<8xf32> to vector<8x1xf32>
    %18 = tpu.reciprocal %17 : vector<8x1xf32> -> vector<8x1xf32>
    %19 = vector.broadcast %18 : vector<8x1xf32> to vector<8x8xf32>
    %20 = arith.mulf %15, %19 : vector<8x8xf32>
    %cst_9 = arith.constant dense<0.000000e+00> : vector<8x32xf32>
    %21 = tpu.matmul %20, %9, %cst_9 {dimension_numbers = #tpu.dot_dimension_numbers<[1], [0], [0], [1], [0, 0, 1, 1], [], []>} : vector<8x8xf32>, vector<8x32xf32>, vector<8x32xf32> -> vector<8x32xf32>
    %c0_10 = arith.constant 0 : index
    %c0_11 = arith.constant 0 : index
    %c0_12 = arith.constant 0 : index
    %22 = vector.load %arg4[%c0_10, %c0_11, %c0_12] : memref<2x8x32xf32, #tpu.memory_space<vmem>>, vector<1x8x32xf32>
    %23 = vector.shape_cast %22 : vector<1x8x32xf32> to vector<8x32xf32>
    %24 = vector.shape_cast %21 : vector<8x32xf32> to vector<1x8x32xf32>
    tpu.vector_store %arg4[%c0_10, %c0_11, %c0_12], %24 {strides = array<i32>} : memref<2x8x32xf32, #tpu.memory_space<vmem>>, vector<1x8x32xf32>,
    %25 = vector.extract_strided_slice %6 {offsets = [24, 0], sizes = [8, 32], strides = [1, 1]} : vector<48x96xf32> to vector<8x32xf32>
    %26 = vector.extract_strided_slice %6 {offsets = [32, 32], sizes = [8, 32], strides = [1, 1]} : vector<48x96xf32> to vector<8x32xf32>
    %27 = vector.extract_strided_slice %6 {offsets = [40, 64], sizes = [8, 32], strides = [1, 1]} : vector<48x96xf32> to vector<8x32xf32>
    %cst_13 = arith.constant dense<0.000000e+00> : vector<8x8xf32>
    %28 = tpu.matmul %25, %26, %cst_13 {dimension_numbers = #tpu.dot_dimension_numbers<[1], [1], [0], [0], [0, 0, 1, 0], [], []>} : vector<8x32xf32>, vector<8x32xf32>, vector<8x8xf32> -> vector<8x8xf32>
    %cst_14 = arith.constant dense<0xFF800000> : vector<8xf32>
    %29 = vector.multi_reduction <maximumf>, %28, %cst_14 [1] : vector<8x8xf32> to vector<8xf32>
    %30 = vector.shape_cast %29 : vector<8xf32> to vector<8x1xf32>
    %31 = vector.broadcast %30 : vector<8x1xf32> to vector<8x8xf32>
    %32 = arith.subf %28, %31 : vector<8x8xf32>
    %33 = math.exp %32 : vector<8x8xf32>
    %cst_15 = arith.constant dense<0.000000e+00> : vector<8xf32>
    %34 = vector.multi_reduction <add>, %33, %cst_15 [1] : vector<8x8xf32> to vector<8xf32>
    %35 = vector.shape_cast %34 : vector<8xf32> to vector<8x1xf32>
    %36 = tpu.reciprocal %35 : vector<8x1xf32> -> vector<8x1xf32>
    %37 = vector.broadcast %36 : vector<8x1xf32> to vector<8x8xf32>
    %38 = arith.mulf %33, %37 : vector<8x8xf32>
    %cst_16 = arith.constant dense<0.000000e+00> : vector<8x32xf32>
    %39 = tpu.matmul %38, %27, %cst_16 {dimension_numbers = #tpu.dot_dimension_numbers<[1], [0], [0], [1], [0, 0, 1, 1], [], []>} : vector<8x8xf32>, vector<8x32xf32>, vector<8x32xf32> -> vector<8x32xf32>
    %c1 = arith.constant 1 : index
    %c0_17 = arith.constant 0 : index
    %c0_18 = arith.constant 0 : index
    %40 = vector.load %arg4[%c1, %c0_17, %c0_18] : memref<2x8x32xf32, #tpu.memory_space<vmem>>, vector<1x8x32xf32>
    %41 = vector.shape_cast %40 : vector<1x8x32xf32> to vector<8x32xf32>
    %42 = vector.shape_cast %39 : vector<8x32xf32> to vector<1x8x32xf32>
    tpu.vector_store %arg4[%c1, %c0_17, %c0_18], %42 {strides = array<i32>} : memref<2x8x32xf32, #tpu.memory_space<vmem>>, vector<1x8x32xf32>,
    return
  }
  func.func @transform_0(%arg0: i32) -> (i32, i32, i32) {
    %c0_i32 = arith.constant 0 : i32
    %c0_i32_0 = arith.constant 0 : i32
    %c0_i32_1 = arith.constant 0 : i32
    return %arg0, %c0_i32, %c0_i32_0 : i32, i32, i32
  }
  func.func @transform_1(%arg0: i32) -> (i32, i32) {
    %c0_i32 = arith.constant 0 : i32
    %c0_i32_0 = arith.constant 0 : i32
    %c0_i32_1 = arith.constant 0 : i32
    return %c0_i32, %c0_i32_0 : i32, i32
  }
  func.func @transform_2(%arg0: i32) -> (i32, i32) {
    %c0_i32 = arith.constant 0 : i32
    %c0_i32_0 = arith.constant 0 : i32
    %c0_i32_1 = arith.constant 0 : i32
    return %c0_i32, %c0_i32_0 : i32, i32
  }
  func.func @transform_3(%arg0: i32) -> (i32, i32, i32) {
    %c0_i32 = arith.constant 0 : i32
    %c0_i32_0 = arith.constant 0 : i32
    %c0_i32_1 = arith.constant 0 : i32
    return %arg0, %c0_i32, %c0_i32_0 : i32, i32, i32
  }
}

</mosaic_0001>

<bundles_post_ra>
// kernel: tpu_custom_call.1
= control target key start
LH: loop header
LB: loop body
LE: loop exit
PB: predicated region body
PF: predicated region fallthrough
CT: control target
= control target key end

     0   :  { %vm26_vm0 = vcmask 64512   ;;  %s384_s0 = inlined_call_operand.vmem [shape: f32[2,24,8], index: 0, kind: input, shape index: {}]   ;;  %s385_s1 = inlined_call_operand.vmem [shape: f32[8,96], index: 1, kind: input, shape index: {}]   ;;  %s386_s2 = inlined_call_operand.vmem [shape: f32[1,96], index: 2, kind: input, shape index: {}]   ;;  %s387_s3 = inlined_call_operand.hbm [shape: f32[2,8,32], index: 3, kind: output, shape index: {}]  }
   0x1   :  { %v21_v0 = vld [vmem:[%s385_s1] sm:$0xff] }
   0x2   :  { %v15_v1 = vld [vmem:[%s384_s0] sm:$0xff]  ;;  %60 = vmatpush.msra.mxu0 %v21_v0  ;;  %273 = vmatpush.msra.mxu3 %v21_v0 }
   0x3   :  { %v19_v2 = vld [vmem:[%s384_s0 + $0x20] sm:$0xff]  ;;  %260 = vmatmul.msk.f32.vlgmr.msra.gmra.mxu0 %vm26_vm0, %v15_v1 }
   0x4   :  { %264 = vmatmul.msk.f32.vlgmr.msra.gmra.mxu3 %vm26_vm0, %v19_v2 }
   0x5   :  { %8 = vsyncpa [#allocation3], 0  ;;  %272 = vmatpush.msra.mxu1 %v21_v0  ;;  %v16_v3 = vld [vmem:[%s384_s0 + $0x8] sm:$0xff]  ;;  %v18_v4 = vld [vmem:[%s384_s0 + $0x18] sm:$0xff]  ;;  %s314_s23 = smov 96   ;;  %vm83_vm1 = vcmask 261120  }
   0x6   :  { %263 = vmatmul.msk.f32.vlgmr.msra.gmra.mxu1 %vm26_vm0, %v18_v4  ;;  %v279_v6 = vld [vmem:[%s386_s2] ss:$0 sm:$0xff]  ;;  %v20_v11 = vld [vmem:[%s384_s0 + $0x28] sm:$0xff]  ;;  %v17_v12 = vld [vmem:[%s384_s0 + $0x10] sm:$0xff]  ;;  %s315_s2 = smov 64   ;;  %s316_s0 = smov [#allocation2]  }
   0x7   :  { %s246_s28 = sshll.u32 %s316_s0, 4  ;;  %s248_s4 = sshll.u32 %s387_s3, 4  ;;  %s247_s28 = int_to_ptr.vmem [resolvable:$true] %s246_s28  ;;  %s249_s4 = int_to_ptr.hbm [resolvable:$true] %s248_s4 }
   0x8   :  { %s317_s5 = smov 128   ;;  %s318_s6 = smov 8  }
   0xb   :  { %261 = vmatmul.msk.f32.gmra.mxu0 %vm26_vm0, %v16_v3 }
   0xc   :  { %265 = vmatmul.msk.f32.gmra.mxu3 %vm26_vm0, %v20_v11 }
  0x13   :  { %262 = vmatmul.msk.f32.gmra.mxu0 %vm26_vm0, %v17_v12 }
  0x80   :  { %v62_v5 = vpop.f32.mrf.mxu0 }
  0x81   :  { %v63_v14 = vadd.f32 %v279_v6, %v62_v5 }
  0x83   :  { %v71_v15 = vpop.f32.mrf.mxu1 }
  0x84   :  { %v72_v17 = vadd.f32 %v279_v6, %v71_v15 }
  0x87   :  { %v74_v9 = vpop.f32.mrf.mxu3 }
  0x88   :  { %v65_v7 = vpop.f32.mrf.mxu0  ;;  %v75_v10 = vadd.f32 %v279_v6, %v74_v9 }
  0x89   :  { %v66_v8 = vadd.f32 %v279_v6, %v65_v7 }
  0x8b   :  { %81 = vrot.lane.b32.xlu0 %v66_v8, %s314_s23 }
  0x8f   :  { %v77_v22 = vpop.f32.mrf.mxu3 }
  0x90   :  { %v68_v18 = vpop.f32.mrf.mxu0  ;;  %v78_v25 = vadd.f32 %v279_v6, %v77_v22 }
  0x91   :  { %v69_v19 = vadd.f32 %v279_v6, %v68_v18 }
  0x93   :  { %162 = vrot.lane.b32.xlu0 %v75_v10, %s314_s23 }
  0x9b   :  { %134 = vrot.lane.b32.xlu0 %v69_v19, %s315_s2 }
  0xfd   :  { %v82_v13 = vpop.permute.xlu0 %81 }
  0xfe   :  { %266 = vmatpush.xpose.msk.msrb.mxu1 %vm83_vm1, %v82_v13 }
 0x101   :  { %267 = vmatmul.msk.f32.vlgmr.msrb.gmra.mxu1 %vm83_vm1, %v63_v14 }
 0x105   :  { %v163_v16 = vpop.permute.xlu0 %162 }
 0x106   :  { %269 = vmatpush.xpose.msk.msrb.mxu3 %vm83_vm1, %v163_v16 }
 0x109   :  { %270 = vmatmul.msk.f32.vlgmr.msrb.gmra.mxu3 %vm83_vm1, %v72_v17 }
 0x10d   :  { %v135_v26 = vpop.permute.xlu0 %134 }
 0x10e   :  { %155 = vmatpush.msra.mxu2 %v135_v26 }
 0x17e   :  { %v106_v20 = vpop.f32.mrf.mxu1 }
 0x17f   :  { %v109_v21 = vsel %vm26_vm0, %v106_v20, -inf }
 0x180   :  { %110 = vmax.xlane.f32.xlu1 %v109_v21 }
 0x18c   :  { %v186_v23 = vpop.f32.mrf.mxu3 }
 0x18d   :  { %v189_v24 = vsel %vm26_vm0, %v186_v23, -inf }
 0x18e   :  { %190 = vmax.xlane.f32.xlu1 %v189_v24 }
 0x1a7   :  { %214 = vrot.lane.b32.xlu1 %v78_v25, %s315_s2 }
 0x1f3   :  { %v111_v27 = vpop.xlane.xlu1 %110 }
 0x1f4   :  { %v112_v28 = vsub.f32 %v106_v20, %v111_v27 }
 0x1f6   :  { %v113_v29 = vmul.f32 1.442695, %v112_v28 }
 0x1f8   :  { %280 = vpow2.f32 %v113_v29 }
 0x1fe   :  { %v281_v30 = vpop.eup %280 }
 0x1ff   :  { %v115_v31 = vsel %vm26_vm0, %v281_v30, 0.0 }
 0x200   :  { %116 = vadd.xlane.f32.xlu2 %v115_v31 }
 0x201   :  { %v191_v32 = vpop.xlane.xlu1 %190 }
 0x202   :  { %v192_v33 = vsub.f32 %v186_v23, %v191_v32 }
 0x204   :  { %v193_v34 = vmul.f32 1.442695, %v192_v33 }
 0x206   :  { %282 = vpow2.f32 %v193_v34 }
 0x20c   :  { %v283_v35 = vpop.eup %282 }
 0x20d   :  { %v195_v36 = vsel %vm26_vm0, %v283_v35, 0.0 }
 0x20e   :  { %196 = vadd.xlane.f32.xlu2 %v195_v36 }
 0x219   :  { %v215_v37 = vpop.permute.xlu1 %214 }
 0x21a   :  { %235 = vmatpush.msrb.mxu2 %v215_v37 }
 0x273   :  { %v117_v38 = vpop.xlane.xlu2 %116 }
 0x274   :  { %284 = vrcp.f32 %v117_v38  ;;  %v129_v42 = vand.u32 2147483648, %v117_v38  ;;  %v127_v44 = vand.u32 2147483647, %v117_v38  ;;  %vm123_vm3 = vweird.f32 %v117_v38 }
 0x276   :  { %v130_v47 = vor.u32 1.1754944e-38, %v129_v42  ;;  %vm128_vm5 = vcmp.eq.f32.partialorder %v127_v44, 8.507059e+37 }
 0x27a   :  { %v285_v39 = vpop.eup %284 }
 0x27b   :  { %v119_v40 = vmul.f32 %v285_v39, %v117_v38  ;;  %vm124_vm2 = vweird.f32 %v285_v39 }
 0x27c   :  { %vm125_vm4 = vmor %vm123_vm3, %vm124_vm2 }
 0x27d   :  { %v120_v41 = vsub.f32 1.0, %v119_v40 }
 0x27f   :  { %v121_v43 = vmul.f32 %v285_v39, %v120_v41 }
 0x281   :  { %v197_v45 = vpop.xlane.xlu2 %196  ;;  %v122_v46 = vadd.f32 %v285_v39, %v121_v43 }
 0x282   :  { %286 = vrcp.f32 %v197_v45  ;;  %v209_v54 = vand.u32 2147483648, %v197_v45  ;;  %v207_v56 = vand.u32 2147483647, %v197_v45  ;;  %vm203_vm7 = vweird.f32 %v197_v45 }
 0x283   :  { %v126_v48 = vsel %vm125_vm4, %v285_v39, %v122_v46 }
 0x284   :  { %v131_v49 = vsel %vm128_vm5, %v130_v47, %v126_v48  ;;  %v210_v58 = vor.u32 1.1754944e-38, %v209_v54  ;;  %vm208_vm9 = vcmp.eq.f32.partialorder %v207_v56, 8.507059e+37 }
 0x285   :  { %v132_v50 = vmul.f32 %v281_v30, %v131_v49 }
 0x287   :  { %268 = vmatmul.msk.f32.vlgmr.msra.gmra.mxu2 %vm26_vm0, %v132_v50 }
 0x288   :  { %v287_v51 = vpop.eup %286 }
 0x289   :  { %v199_v52 = vmul.f32 %v287_v51, %v197_v45  ;;  %vm204_vm6 = vweird.f32 %v287_v51 }
 0x28a   :  { %vm205_vm8 = vmor %vm203_vm7, %vm204_vm6 }
 0x28b   :  { %v200_v53 = vsub.f32 1.0, %v199_v52 }
 0x28d   :  { %v201_v55 = vmul.f32 %v287_v51, %v200_v53 }
 0x28f   :  { %v202_v57 = vadd.f32 %v287_v51, %v201_v55 }
 0x291   :  { %v206_v59 = vsel %vm205_vm8, %v287_v51, %v202_v57 }
 0x292   :  { %v211_v60 = vsel %vm208_vm9, %v210_v58, %v206_v59 }
 0x293   :  { %v212_v61 = vmul.f32 %v283_v35, %v211_v60 }
 0x295   :  { %271 = vmatmul.msk.f32.vlgmr.msrb.gmra.mxu2 %vm26_vm0, %v212_v61 }
 0x30a   :  { %v157_v62 = vpop.f32.mrf.mxu2 }
 0x30b   :  { %160 = vst.msk [vmem:[#allocation2] sm:$0xff] %vm83_vm1, %v157_v62 }
 0x318   :  { %v237_v63 = vpop.f32.mrf.mxu2 }
 0x319   :  { %241 = vst.msk [vmem:[#allocation2 + $0x8] sm:$0xff] %vm83_vm1, %v237_v63 }
 0x31a   :  { %254 = dma.vmem_to_hbm [thread:$0]  %s247_s28, 256, %s249_s4, [#allocation3], %s317_s5, %s317_s5, %s318_s6  }
 0x31b   :  { %312 = dma.done.wait [#allocation3], 256  }
 0x31c   :  { %313 = vsyncadd [#allocation3], 4294967040 }
 0x31d   :  { %259 = vsyncpa [#allocation3], 1 }

</bundles_post_ra>
